<compile_context>
chip_gen: v7x
topology: tpu7x:2x2x1
jax: 0.10.0
libtpu: 0.0.40
codegen_flags: <defaults>
</compile_context>

<pallas_src>
import jax
import jax.numpy as jnp
from jax.experimental import pallas as pl
from jax.experimental.pallas import tpu as pltpu

_LANE = 128
# Lane widths tried for the (rows, lane_w) reshape, widest first (free,
# contiguous reshape when lane_w divides the element count).
_LANE_CANDIDATES = (32768, 16384, 8192, 4096, 2048, 1024, 512, 256, 128)
# Below this, kernel launch / pipeline overhead beats XLA's fused FMA.
_FAST_PATH_BYTES = 4 << 20


def _round_up(v, m):
    return ((v + m - 1) // m) * m


def _sublane_align(itemsize):
    # Native sublane tile: 8 rows for 32-bit, 16 for 16-bit, 32 for 8-bit dtypes.
    return {4: 8, 2: 16, 1: 32}.get(itemsize, 8)


def _tpu_generation():
    """Best-effort TPU generation detection ('v5e', 'v6e', 'v7x', or '')."""
    try:
        kind = jax.devices()[0].device_kind.lower()
    except Exception:
        return ""
    if "v7" in kind:
        return "v7x"
    if "v6" in kind:
        return "v6e"
    if "v5" in kind and ("lite" in kind or "v5e" in kind):
        return "v5e"
    return ""


def _tiling_policy():
    """Returns (target_tile_bytes, min_grid_steps, want_even_steps, vmem_cap)."""
    gen = _tpu_generation()
    if gen == "v7x":
        # 3.2 TB/s HBM per TC makes the ~0.35us per-step cost dominant for small
        # tiles; 2 TCs want >=8 (even) grid steps; 64 MiB physical VMEM per TC.
        return 6 << 20, 8, True, 56 << 20
    if gen == "v5e":
        # 0.82 TB/s HBM: modest tiles already near roofline. 128 MiB physical
        # VMEM but only 16 MiB default scoped -> set vmem_limit_bytes explicitly.
        return 3 << 20, 4, False, 96 << 20
    # v6e (and unknown): single TensorCore, 128 MiB physical VMEM.
    return 4 << 20, 4, False, 96 << 20


def _calib_kernel(ab_ref, x_ref, o_ref):
    # ab_ref lives in SMEM (float32): ab_ref[0] = a (scale), ab_ref[1] = b (bias).
    # Compute in f32 (exact vs. the XLA reference), cast once on store.
    a = ab_ref[0]
    b = ab_ref[1]
    x = x_ref[...]
    o_ref[...] = (a * x.astype(jnp.float32) + b).astype(o_ref.dtype)


def _xla_fma(x, a, b):
    # NOTE: for integer dtypes this truncates toward zero on the final cast,
    # matching the kernel path (PyTorch would promote to float instead).
    return (jnp.float32(a) * x.astype(jnp.float32) + jnp.float32(b)).astype(x.dtype)


def lin_bin_calibrator(x, a, b, *, min_kernel_bytes=_FAST_PATH_BYTES):
    """Applies y = a * x + b elementwise (LinBinCalibrator.forward)."""
    orig_shape = x.shape
    dtype = x.dtype
    itemsize = jnp.dtype(dtype).itemsize
    n = x.size

    # Fast path: small tensors are launch/pipeline-overhead dominated.
    if n == 0 or n * itemsize < min_kernel_bytes:
        return _xla_fma(x, a, b)

    flat = x.reshape(-1)

    # Pick the widest lane width that divides n exactly (no padding needed).
    lane_w = None
    for cand in _LANE_CANDIDATES:
        if n % cand == 0:
            lane_w = cand
            break

    tail = None
    if lane_w is None:
        # n not a multiple of 128: run the kernel on the aligned prefix and let
        # XLA handle the (< lane_w element) tail. No full-array pad/slice copies.
        lane_w = 512
        n_main = (n // lane_w) * lane_w
        if n_main == 0:
            return _xla_fma(x, a, b)
        tail = flat[n_main:]
    else:
        n_main = n

    rows = n_main // lane_w
    sub = _sublane_align(itemsize)
    target_tile_bytes, min_steps, want_even, vmem_cap = _tiling_policy()

    if rows <= sub:
        row_block = rows  # block covers the full row extent (always legal)
    else:
        target = max(sub, target_tile_bytes // (lane_w * itemsize))
        # Keep at least `min_steps` grid steps so the DMA pipeline has overlap
        # (and, on v7x, so both TensorCores receive blocks).
        cap = max(sub, pl.cdiv(rows, min_steps))
        row_block = min(target, cap, rows)
        row_block = max(sub, (row_block // sub) * sub)
        if want_even:
            # v7x megacore: prefer an even step count so neither core idles.
            steps = pl.cdiv(rows, row_block)
            if steps > 1 and steps % 2 == 1:
                rb2 = max(sub, _round_up(pl.cdiv(rows, steps + 1), sub))
                if pl.cdiv(rows, rb2) % 2 == 0:
                    row_block = rb2

    grid = (pl.cdiv(rows, row_block),)  # partial tail block masked by Pallas
    x2d = (flat[:n_main] if tail is not None else flat).reshape(rows, lane_w)
    ab = jnp.array([a, b], dtype=jnp.float32)

    # VMEM budget: in + out tiles, double buffered, plus generous headroom.
    tile_bytes = row_block * lane_w * itemsize
    vmem_limit = min(vmem_cap, max(16 << 20, 4 * tile_bytes + (8 << 20)))

    out2d = pl.pallas_call(
        _calib_kernel,
        out_shape=jax.ShapeDtypeStruct((rows, lane_w), dtype),
        grid=grid,
        in_specs=[
            pl.BlockSpec(memory_space=pltpu.SMEM),                # (a, b) scalars
            pl.BlockSpec((row_block, lane_w), lambda i: (i, 0)),  # x tile
        ],
        out_specs=pl.BlockSpec((row_block, lane_w), lambda i: (i, 0)),
        compiler_params=pltpu.CompilerParams(
            dimension_semantics=("parallel",),
            vmem_limit_bytes=int(vmem_limit)),
    )(ab, x2d)

    if tail is not None:
        out_flat = jnp.concatenate([out2d.reshape(-1), _xla_fma(tail, a, b)])
        return out_flat.reshape(orig_shape)
    return out2d.reshape(orig_shape)


if __name__ == "__main__":
    key = jax.random.PRNGKey(0)
    a = 1.7
    b = -0.25

    def ref(x):
        return (jnp.float32(a) * x.astype(jnp.float32) + jnp.float32(b)).astype(x.dtype)

    # 1) Small NCHW score tensor (module-consistent shape) -> XLA fast path.
    x_small = jax.random.normal(key, (2, 4, 16, 16), dtype=jnp.float32)
    y_small = jax.block_until_ready(lin_bin_calibrator(x_small, a, b))
    assert y_small.shape == x_small.shape
    assert jnp.allclose(y_small, ref(x_small), atol=1e-6, rtol=1e-6)

    # 2) Same small tensor forced through the Pallas kernel path.
    y_kern = jax.block_until_ready(
        lin_bin_calibrator(x_small, a, b, min_kernel_bytes=0))
    assert jnp.allclose(y_kern, ref(x_small), atol=1e-6, rtol=1e-6)

    # 3) Awkward size (not a multiple of 128) -> aligned-prefix kernel + XLA tail.
    x_odd = jax.random.normal(key, (3, 5, 7, 11), dtype=jnp.float32)
    y_odd = jax.block_until_ready(
        lin_bin_calibrator(x_odd, a, b, min_kernel_bytes=0))
    assert y_odd.shape == x_odd.shape
    assert jnp.allclose(y_odd, ref(x_odd), atol=1e-6, rtol=1e-6)

    # 4) Moderately sized tensor -> kernel path with wide lane-dense tiles.
    x_big = jax.random.normal(key, (8, 16, 64, 64), dtype=jnp.float32)
    y_big = jax.block_until_ready(
        lin_bin_calibrator(x_big, a, b, min_kernel_bytes=0))
    assert y_big.shape == x_big.shape
    assert jnp.allclose(y_big, ref(x_big), atol=1e-6, rtol=1e-6)

    # 5) bf16 input -> exercises 16-row sublane alignment; f32 math, one cast.
    x_bf16 = jax.random.normal(key, (4, 8, 16, 16), dtype=jnp.bfloat16)
    y_bf16 = jax.block_until_ready(
        lin_bin_calibrator(x_bf16, a, b, min_kernel_bytes=0))
    assert y_bf16.dtype == jnp.bfloat16
    assert jnp.allclose(y_bf16.astype(jnp.float32), ref(x_bf16).astype(jnp.float32),
                        atol=1e-2, rtol=1e-2)

    print("KERNEL_OK")
</pallas_src>

<mosaic_0001>
module attributes {stable_mosaic.version = 11 : i64} {
  func.func @_calib_kernel(%arg0: i32, %arg1: memref<2xf32, #tpu.memory_space<smem>>, %arg2: memref<1x2048xf32, #tpu.memory_space<vmem>>, %arg3: memref<1x2048xf32, #tpu.memory_space<vmem>>) attributes {dimension_semantics = [#tpu.dimension_semantics<parallel>], iteration_bounds = array<i64: 1>, scalar_prefetch = 0 : i64, scratch_operands = 0 : i64, tpu.core_type = #tpu.core_type<tc>, window_params = [{transform_indices = @transform_0, window_bounds = array<i64: 2>}, {transform_indices = @transform_1, window_bounds = array<i64: 1, 2048>}, {transform_indices = @transform_2, window_bounds = array<i64: 1, 2048>}]} {
    %c0 = arith.constant 0 : index
    %0 = memref.load %arg1[%c0] : memref<2xf32, #tpu.memory_space<smem>>
    %c1 = arith.constant 1 : index
    %1 = memref.load %arg1[%c1] : memref<2xf32, #tpu.memory_space<smem>>
    %c0_0 = arith.constant 0 : index
    %c0_1 = arith.constant 0 : index
    %2 = vector.load %arg2[%c0_0, %c0_1] : memref<1x2048xf32, #tpu.memory_space<vmem>>, vector<1x2048xf32>
    %3 = vector.broadcast %0 : f32 to vector<1x2048xf32>
    %4 = arith.mulf %3, %2 : vector<1x2048xf32>
    %5 = vector.broadcast %1 : f32 to vector<1x2048xf32>
    %6 = arith.addf %4, %5 : vector<1x2048xf32>
    %c0_2 = arith.constant 0 : index
    %c0_3 = arith.constant 0 : index
    %7 = vector.load %arg3[%c0_2, %c0_3] : memref<1x2048xf32, #tpu.memory_space<vmem>>, vector<1x2048xf32>
    tpu.vector_store %arg3[%c0_2, %c0_3], %6 {strides = array<i32>} : memref<1x2048xf32, #tpu.memory_space<vmem>>, vector<1x2048xf32>,
    return
  }
  func.func @transform_0(%arg0: i32) -> i32 {
    %c0_i32 = arith.constant 0 : i32
    %c0_i32_0 = arith.constant 0 : i32
    return %c0_i32 : i32
  }
  func.func @transform_1(%arg0: i32) -> (i32, i32) {
    %c0_i32 = arith.constant 0 : i32
    %c0_i32_0 = arith.constant 0 : i32
    return %arg0, %c0_i32 : i32, i32
  }
  func.func @transform_2(%arg0: i32) -> (i32, i32) {
    %c0_i32 = arith.constant 0 : i32
    %c0_i32_0 = arith.constant 0 : i32
    return %arg0, %c0_i32 : i32, i32
  }
}

</mosaic_0001>

<bundles_post_ra>
// kernel: tpu_custom_call.1
= control target key start
LH: loop header
LB: loop body
LE: loop exit
PB: predicated region body
PF: predicated region fallthrough
CT: control target
= control target key end

     0   :  { %7 = vsyncpa [#allocation5], 0  ;;  %s181_s0 = inlined_call_operand.hbm [shape: f32[2], index: 0, kind: input, shape index: {}]   ;;  %s182_s1 = inlined_call_operand.hbm [shape: f32[1,2048], index: 1, kind: input, shape index: {}]   ;;  %s183_s2 = inlined_call_operand.hbm [shape: f32[1,2048], index: 2, kind: output, shape index: {}]  }
   0x1   :  { %8 = vsyncpa [#allocation3], 0 }
   0x2   :  { %9 = vsyncpa [#allocation4], 0  ;;  %s67_s11 = scalar_lea.hbm %s181_s0, 16 }
   0x3   :  { %p68_p0 = scmp.ne.s32.totalorder %s181_s0, %s67_s11  ;;  %p71_p1 = scmp.lt.u32.totalorder %s67_s11, %s181_s0 }
   0x5   :  { %p73_p2 = pnand %p71_p1, %p68_p0 }
   0x7   :  { %76 = shalt.err (!%p73_p2)
}
   0x8   :  { %s127_s16 = smov [#allocation2]   ;;  %s128_s19 = smov [#allocation6]  }
   0x9   :  { %17 = dma.hbm_to_smem %s181_s0, 16, %s127_s16, [#allocation5]  }
   0xa   :  { %s24_s20 = sshll.u32 %s128_s19, 4  ;;  %s77_s23 = scalar_lea.hbm %s182_s1, 256  ;;  %s25_s20 = int_to_ptr.vmem [resolvable:$true] %s24_s20 }
   0xb   :  { %p78_p3 = scmp.ne.s32.totalorder %s182_s1, %s77_s23  ;;  %p81_p4 = scmp.lt.u32.totalorder %s77_s23, %s182_s1 }
   0xd   :  { %p83_p5 = pnand %p81_p4, %p78_p3 }
   0xf   :  { %86 = shalt.err (!%p83_p5)
}
  0x10   :  { %s87_s28 = scalar_lea.vmem %s25_s20, 256  ;;  %p92_p7 = scmp.lt.s32.totalorder %s25_s20, %s25_s20 }
  0x11   :  { %p88_p6 = scmp.ne.s32.totalorder %s25_s20, %s87_s28  ;;  %p93_p8 = scmp.lt.s32.totalorder %s87_s28, %s87_s28 }
  0x13   :  { %p94_p9 = por %p93_p8, %p92_p7 }
  0x15   :  { %p95_p10 = pnand %p94_p9, %p88_p6 }
  0x17   :  { %98 = shalt.err (!%p95_p10)
}
  0x18   :  { %27 = dma.hbm_to_vmem [thread:$0]  %s182_s1, 256, %s25_s20, [#allocation3]  }
  0x19   :  { %121 = dma.done.wait [#allocation5], 16  }
  0x1a   :  { %122 = vsyncadd [#allocation5], 4294967280 }
  0x1b   :  { %123 = dma.done.wait [#allocation3], 256  }
  0x1c   :  { %124 = vsyncadd [#allocation3], 4294967040 }
  0x1d   :  { %34 = sfence }
  0x1e   :  { %s35_s30 = sld [smem:[#allocation2]]  ;;  %s63_s3 = sld [smem:[#allocation2 + $0x1]]  ;;  %v37_v0 = vld [vmem:[#allocation6] sm:$0xff]  ;;  %v38_v1 = vld [vmem:[#allocation6 + $0x8] sm:$0xff] }
  0x1f   :  { %s129_s4 = smov [#allocation7]  }
  0x20   :  { %s53_s5 = sshll.u32 %s129_s4, 4  ;;  %s54_s5 = int_to_ptr.vmem [resolvable:$true] %s53_s5 }
  0x21   :  { %s99_s1 = scalar_lea.vmem %s54_s5, 256  ;;  %p104_p12 = scmp.lt.s32.totalorder %s54_s5, %s54_s5 }
  0x22   :  { %p100_p11 = scmp.ne.s32.totalorder %s54_s5, %s99_s1  ;;  %p105_p13 = scmp.lt.s32.totalorder %s99_s1, %s99_s1 }
  0x24   :  { %v39_v2 = vstv %s35_s30  ;;  %v42_v3 = vstv %s63_s3  ;;  %p106_p0 = por %p105_p13, %p104_p12 }
  0x25   :  { %v40_v4 = vmul.f32 %v39_v2, %v37_v0  ;;  %v41_v5 = vmul.f32 %v39_v2, %v38_v1 }
  0x26   :  { %p107_p1 = pnand %p106_p0, %p100_p11 }
  0x27   :  { %v43_v6 = vadd.f32 %v42_v3, %v40_v4  ;;  %v44_v7 = vadd.f32 %v42_v3, %v41_v5 }
  0x29   :  { %45 = vst [vmem:[#allocation7] sm:$0xff] %v43_v6  ;;  %46 = vst [vmem:[#allocation7 + $0x8] sm:$0xff] %v44_v7 }
  0x2a   :  { %110 = shalt.err (!%p107_p1)
}
  0x2b   :  { %s111_s8 = scalar_lea.hbm %s183_s2, 256 }
  0x2c   :  { %p112_p2 = scmp.ne.s32.totalorder %s183_s2, %s111_s8  ;;  %p115_p3 = scmp.lt.u32.totalorder %s111_s8, %s183_s2 }
  0x2e   :  { %p117_p4 = pnand %p115_p3, %p112_p2 }
  0x30   :  { %120 = shalt.err (!%p117_p4)
}
  0x31   :  { %56 = dma.vmem_to_hbm [thread:$0]  %s54_s5, 256, %s183_s2, [#allocation4]  }
  0x32   :  { %125 = dma.done.wait [#allocation4], 256  }
  0x33   :  { %126 = vsyncadd [#allocation4], 4294967040 }
  0x34   :  { %60 = vsyncpa [#allocation3], 1 }
  0x35   :  { %61 = vsyncpa [#allocation4], 1 }
  0x36   :  { %62 = vsyncpa [#allocation5], 1 }

</bundles_post_ra>
